<compile_context>
chip_gen: v5e
topology: v5e:2x2
jax: 0.10.0
libtpu: 0.0.40
codegen_flags: <defaults>
</compile_context>

<pallas_src>
import functools

import jax
import jax.numpy as jnp
from jax import lax
from jax.experimental import pallas as pl
from jax.experimental.pallas import tpu as pltpu


def _bert_self_output_kernel(h_ref, res_ref, w_ref, b_ref, g_ref, beta_ref,
                             o_ref, *, eps, chunk):
    tm, H = h_ref.shape
    n_chunks = tm // chunk
    inv_h = jnp.float32(1.0 / H)

    # Resident params: weight kept in its storage dtype for the MXU; the small
    # 1xH vectors are (already) f32.
    w = w_ref[...]
    b = b_ref[...].astype(jnp.float32)
    g = g_ref[...].astype(jnp.float32)
    bt = beta_ref[...].astype(jnp.float32)

    def body(j, carry):
        r0 = pl.multiple_of(j * chunk, chunk)

        # Dense: rows @ W  (W already [H_in, H_out]) with f32 MXU accumulation.
        x = jnp.dot(h_ref[pl.ds(r0, chunk), :], w,
                    preferred_element_type=jnp.float32)
        x = x + b

        # TODO(synk): nn.Dropout is identity in eval mode; training-mode RNG
        # masking is not implemented.

        # Residual add (f32 epilogue; v5e VPU/EUP have no bf16 path).
        y = x + res_ref[pl.ds(r0, chunk), :].astype(jnp.float32)

        # Two-pass LayerNorm statistics over the hidden (last) axis: mean
        # first, then centered variance -- no E[y^2]-mean^2 cancellation.
        mean = jnp.sum(y, axis=-1, keepdims=True) * inv_h
        c = y - mean
        var = jnp.sum(c * c, axis=-1, keepdims=True) * inv_h

        # rsqrt lowers to the EUP slot (co-issues with MXU/VPU work) -- keep
        # it as rsqrt, do NOT rewrite as 1/sqrt or a divide.
        normed = c * lax.rsqrt(var + eps)
        out = normed * g + bt
        o_ref[pl.ds(r0, chunk), :] = out.astype(o_ref.dtype)
        return carry

    # Fully unrolled inner loop: gives the LLO scheduler visibility to overlap
    # chunk j's matmul with chunk j-1's LayerNorm epilogue.
    lax.fori_loop(0, n_chunks, body, 0, unroll=True)


def prepare_bert_self_output_params(weight, bias, gamma, beta,
                                    *, param_dtype=jnp.float32):
    """One-time parameter preparation (hoisted out of the per-call path).

    weight : torch nn.Linear layout [out, in]  -> returned transposed [in, out]
             in `param_dtype` (e.g. bf16 halves the resident weight DMA).
    bias / gamma / beta -> (1, H) float32 (LayerNorm epilogue is always f32).
    """
    weight_t = jnp.asarray(weight).T.astype(param_dtype)
    bias2d = jnp.asarray(bias).reshape(1, -1).astype(jnp.float32)
    gamma2d = jnp.asarray(gamma).reshape(1, -1).astype(jnp.float32)
    beta2d = jnp.asarray(beta).reshape(1, -1).astype(jnp.float32)
    return weight_t, bias2d, gamma2d, beta2d


def _vmem_capacity_bytes():
    try:
        return int(pltpu.get_tpu_info().vmem_capacity_bytes)
    except Exception:
        return 64 << 20  # conservative (v7x per-TC) fallback


def bert_self_output(hidden_states, input_tensor, weight_t, bias2d, gamma2d,
                     beta2d, *, eps=1e-12, row_block=None, chunk=256):
    """Fused BertSelfOutput forward.

    hidden_states, input_tensor : [B, S, H]  (streamed in their own dtype;
                                   bf16 in -> bf16 out, f32 accumulation/LN)
    weight_t, bias2d, gamma2d, beta2d : from prepare_bert_self_output_params()
    """
    B, S, H = hidden_states.shape
    M = B * S
    out_dtype = hidden_states.dtype

    h2d = hidden_states.reshape(M, H)
    r2d = input_tensor.reshape(M, H)

    act_bytes = (jnp.dtype(h2d.dtype).itemsize
                 + jnp.dtype(r2d.dtype).itemsize
                 + jnp.dtype(out_dtype).itemsize)
    w_bytes = jnp.dtype(weight_t.dtype).itemsize

    vmem_cap = _vmem_capacity_bytes()
    big_vmem = vmem_cap >= (100 << 20)           # v5e / v6e: 128 MiB physical
    vmem_ceiling = (100 << 20) if big_vmem else (56 << 20)  # headroom on v7x

    if row_block is None:
        # Bigger tiles on 128-MiB parts; bf16 activation streams allow 2x rows.
        if big_vmem:
            row_block = 2048 if act_bytes <= 6 else 1024
        else:
            row_block = 1024 if act_bytes <= 6 else 512

    # --- row tile (sublane axis must be a multiple of 8 unless == M) ---
    tm = min(row_block, M)
    if tm < M:
        tm = max(8, (tm // 8) * 8)
    # Keep >=2 grid steps for large M so ("parallel",) can shard across the
    # two v7x TensorCores (negligible overhead on single-TC chips).
    if M >= 512 and pl.cdiv(M, tm) < 2:
        tm = min(tm, max(256, (((M + 1) // 2) // 256) * 256))

    def _needed(tm_, chunk_):
        return (2 * tm_ * H * act_bytes            # double-buffered act streams
                + H * H * w_bytes                  # single-buffered weight
                + 3 * H * 4                        # bias / gamma / beta
                + 4 * chunk_ * H * 4)              # f32 intermediates per chunk

    # Shrink the tile until it fits comfortably under the generation ceiling.
    while tm > 256 and _needed(tm, min(chunk, tm)) > int(0.85 * vmem_ceiling):
        tm = max(256, ((tm // 2) // 8) * 8)

    # Inner sub-chunk must tile tm exactly (fall back to a single chunk).
    chunk = min(chunk, tm)
    if tm % chunk != 0:
        chunk = tm

    grid = (pl.cdiv(M, tm),)
    vmem_limit = min(max(int(1.3 * _needed(tm, chunk)) + (2 << 20), 8 << 20),
                     vmem_ceiling)

    out2d = pl.pallas_call(
        functools.partial(_bert_self_output_kernel, eps=eps, chunk=chunk),
        out_shape=jax.ShapeDtypeStruct((M, H), out_dtype),
        grid_spec=pltpu.PrefetchScalarGridSpec(
            num_scalar_prefetch=0,
            grid=grid,
            in_specs=[
                # activation streams: double-buffered (default depth 2; on v7x
                # a Buffered(3) sweep is worth trying once compute ~= DMA)
                pl.BlockSpec((tm, H), lambda i: (i, 0)),   # hidden_states rows
                pl.BlockSpec((tm, H), lambda i: (i, 0)),   # residual rows
                # constant-index params: single-buffered (fetched once)
                pl.BlockSpec((H, H), lambda i: (0, 0),
                             pipeline_mode=pl.Buffered(1)),   # weight (full)
                pl.BlockSpec((1, H), lambda i: (0, 0),
                             pipeline_mode=pl.Buffered(1)),   # bias
                pl.BlockSpec((1, H), lambda i: (0, 0),
                             pipeline_mode=pl.Buffered(1)),   # gamma
                pl.BlockSpec((1, H), lambda i: (0, 0),
                             pipeline_mode=pl.Buffered(1)),   # beta
            ],
            out_specs=pl.BlockSpec((tm, H), lambda i: (i, 0)),
        ),
        compiler_params=pltpu.CompilerParams(
            dimension_semantics=("parallel",),   # shards across TCs on v7x
            vmem_limit_bytes=vmem_limit),
    )(h2d, r2d, weight_t, bias2d, gamma2d, beta2d)

    return out2d.reshape(B, S, H)


def _reference(hidden_states, input_tensor, weight, bias, gamma, beta, eps):
    # weight in torch nn.Linear layout: [out, in]
    x = jnp.einsum("bsh,oh->bso", hidden_states, weight) + bias
    y = x + input_tensor
    mean = jnp.mean(y, axis=-1, keepdims=True)
    var = jnp.mean(jnp.square(y - mean), axis=-1, keepdims=True)
    return (y - mean) * lax.rsqrt(var + eps) * gamma + beta


if __name__ == "__main__":
    B, S, H = 2, 8, 32
    eps = 1e-12

    key = jax.random.PRNGKey(0)
    k1, k2, k3, k4 = jax.random.split(key, 4)

    hidden_states = jax.random.normal(k1, (B, S, H), dtype=jnp.float32)
    input_tensor = jax.random.normal(k2, (B, S, H), dtype=jnp.float32)

    # nn.Linear(H, H) weight in torch layout [out, in]; LayerNorm(H) params.
    weight = jax.random.normal(k3, (H, H), dtype=jnp.float32) * 0.02
    bias = jax.random.normal(k4, (H,), dtype=jnp.float32) * 0.02
    gamma = jnp.ones((H,), dtype=jnp.float32)
    beta = jnp.zeros((H,), dtype=jnp.float32)

    ref = _reference(hidden_states, input_tensor, weight, bias, gamma, beta, eps)

    # ---- f32 path (exact check against reference) ----
    w_t, b2d, g2d, bt2d = prepare_bert_self_output_params(weight, bias, gamma, beta)
    out = bert_self_output(hidden_states, input_tensor, w_t, b2d, g2d, bt2d, eps=eps)
    out = jax.block_until_ready(out)
    assert out.shape == (B, S, H)
    assert jnp.allclose(out, ref, atol=1e-5, rtol=1e-5), "f32 mismatch vs reference"

    # ---- bf16 streaming path: bf16 activations/weight/output, f32 acc + LN ----
    w_t16, b2d16, g2d16, bt2d16 = prepare_bert_self_output_params(
        weight, bias, gamma, beta, param_dtype=jnp.bfloat16)
    out_bf16 = bert_self_output(hidden_states.astype(jnp.bfloat16),
                                input_tensor.astype(jnp.bfloat16),
                                w_t16, b2d16, g2d16, bt2d16, eps=eps)
    out_bf16 = jax.block_until_ready(out_bf16)
    assert out_bf16.dtype == jnp.bfloat16
    assert jnp.allclose(out_bf16.astype(jnp.float32), ref, atol=1e-1, rtol=1e-1), \
        "bf16 mismatch vs reference"

    print("KERNEL_OK")
</pallas_src>

<mosaic_0001>
module attributes {stable_mosaic.version = 11 : i64} {
  func.func @_bert_self_output_kernel(%arg0: i32, %arg1: memref<16x32xf32, #tpu.memory_space<vmem>>, %arg2: memref<16x32xf32, #tpu.memory_space<vmem>>, %arg3: memref<32x32xf32, #tpu.memory_space<vmem>>, %arg4: memref<1x32xf32, #tpu.memory_space<vmem>>, %arg5: memref<1x32xf32, #tpu.memory_space<vmem>>, %arg6: memref<1x32xf32, #tpu.memory_space<vmem>>, %arg7: memref<16x32xf32, #tpu.memory_space<vmem>>) attributes {dimension_semantics = [#tpu.dimension_semantics<parallel>], iteration_bounds = array<i64: 1>, scalar_prefetch = 0 : i64, scratch_operands = 0 : i64, tpu.core_type = #tpu.core_type<tc>, window_params = [{transform_indices = @transform_0, window_bounds = array<i64: 16, 32>}, {transform_indices = @transform_1, window_bounds = array<i64: 16, 32>}, {pipeline_mode = #tpu.pipeline_mode<synchronous>, transform_indices = @transform_2, window_bounds = array<i64: 32, 32>}, {pipeline_mode = #tpu.pipeline_mode<synchronous>, transform_indices = @transform_3, window_bounds = array<i64: 1, 32>}, {pipeline_mode = #tpu.pipeline_mode<synchronous>, transform_indices = @transform_4, window_bounds = array<i64: 1, 32>}, {pipeline_mode = #tpu.pipeline_mode<synchronous>, transform_indices = @transform_5, window_bounds = array<i64: 1, 32>}, {transform_indices = @transform_6, window_bounds = array<i64: 16, 32>}]} {
    %c0 = arith.constant 0 : index
    %c0_0 = arith.constant 0 : index
    %0 = vector.load %arg3[%c0, %c0_0] : memref<32x32xf32, #tpu.memory_space<vmem>>, vector<32x32xf32>
    %c0_1 = arith.constant 0 : index
    %c0_2 = arith.constant 0 : index
    %1 = vector.load %arg4[%c0_1, %c0_2] : memref<1x32xf32, #tpu.memory_space<vmem>>, vector<1x32xf32>
    %c0_3 = arith.constant 0 : index
    %c0_4 = arith.constant 0 : index
    %2 = vector.load %arg5[%c0_3, %c0_4] : memref<1x32xf32, #tpu.memory_space<vmem>>, vector<1x32xf32>
    %c0_5 = arith.constant 0 : index
    %c0_6 = arith.constant 0 : index
    %3 = vector.load %arg6[%c0_5, %c0_6] : memref<1x32xf32, #tpu.memory_space<vmem>>, vector<1x32xf32>
    %cst = arith.constant 3.125000e-02 : f32
    %c0_i32 = arith.constant 0 : i32
    %c16_i32 = arith.constant 16 : i32
    %4 = arith.muli %c0_i32, %c16_i32 : i32
    %5 = tpu.assume_multiple %4, 16 : i32
    %6 = arith.index_cast %5 : i32 to index
    %c0_7 = arith.constant 0 : index
    %7 = vector.load %arg1[%6, %c0_7] : memref<16x32xf32, #tpu.memory_space<vmem>>, vector<16x32xf32>
    %cst_8 = arith.constant dense<0.000000e+00> : vector<16x32xf32>
    %8 = tpu.matmul %7, %0, %cst_8 {dimension_numbers = #tpu.dot_dimension_numbers<[1], [0], [0], [1], [0, 0, 1, 1], [], []>} : vector<16x32xf32>, vector<32x32xf32>, vector<16x32xf32> -> vector<16x32xf32>
    %9 = vector.broadcast %1 : vector<1x32xf32> to vector<16x32xf32>
    %10 = arith.addf %8, %9 : vector<16x32xf32>
    %11 = arith.index_cast %5 : i32 to index
    %c0_9 = arith.constant 0 : index
    %12 = vector.load %arg2[%11, %c0_9] : memref<16x32xf32, #tpu.memory_space<vmem>>, vector<16x32xf32>
    %13 = arith.addf %10, %12 : vector<16x32xf32>
    %cst_10 = arith.constant dense<0.000000e+00> : vector<16xf32>
    %14 = vector.multi_reduction <add>, %13, %cst_10 [1] : vector<16x32xf32> to vector<16xf32>
    %15 = vector.shape_cast %14 : vector<16xf32> to vector<16x1xf32>
    %16 = vector.broadcast %cst : f32 to vector<16x1xf32>
    %17 = arith.mulf %15, %16 : vector<16x1xf32>
    %18 = vector.broadcast %17 : vector<16x1xf32> to vector<16x32xf32>
    %19 = arith.subf %13, %18 : vector<16x32xf32>
    %20 = arith.mulf %19, %19 : vector<16x32xf32>
    %cst_11 = arith.constant dense<0.000000e+00> : vector<16xf32>
    %21 = vector.multi_reduction <add>, %20, %cst_11 [1] : vector<16x32xf32> to vector<16xf32>
    %22 = vector.shape_cast %21 : vector<16xf32> to vector<16x1xf32>
    %23 = vector.broadcast %cst : f32 to vector<16x1xf32>
    %24 = arith.mulf %22, %23 : vector<16x1xf32>
    %cst_12 = arith.constant 9.99999996E-13 : f32
    %25 = vector.broadcast %cst_12 : f32 to vector<16x1xf32>
    %26 = arith.addf %24, %25 : vector<16x1xf32>
    %27 = math.rsqrt %26 : vector<16x1xf32>
    %28 = vector.broadcast %27 : vector<16x1xf32> to vector<16x32xf32>
    %29 = arith.mulf %19, %28 : vector<16x32xf32>
    %30 = vector.broadcast %2 : vector<1x32xf32> to vector<16x32xf32>
    %31 = arith.mulf %29, %30 : vector<16x32xf32>
    %32 = vector.broadcast %3 : vector<1x32xf32> to vector<16x32xf32>
    %33 = arith.addf %31, %32 : vector<16x32xf32>
    %34 = arith.index_cast %5 : i32 to index
    %c0_13 = arith.constant 0 : index
    %35 = vector.load %arg7[%34, %c0_13] : memref<16x32xf32, #tpu.memory_space<vmem>>, vector<16x32xf32>
    tpu.vector_store %arg7[%34, %c0_13], %33 {strides = array<i32>} : memref<16x32xf32, #tpu.memory_space<vmem>>, vector<16x32xf32>,
    %c1_i32 = arith.constant 1 : i32
    return
  }
  func.func @transform_0(%arg0: i32) -> (i32, i32) {
    %c0_i32 = arith.constant 0 : i32
    %c0_i32_0 = arith.constant 0 : i32
    return %arg0, %c0_i32 : i32, i32
  }
  func.func @transform_1(%arg0: i32) -> (i32, i32) {
    %c0_i32 = arith.constant 0 : i32
    %c0_i32_0 = arith.constant 0 : i32
    return %arg0, %c0_i32 : i32, i32
  }
  func.func @transform_2(%arg0: i32) -> (i32, i32) {
    %c0_i32 = arith.constant 0 : i32
    %c0_i32_0 = arith.constant 0 : i32
    %c0_i32_1 = arith.constant 0 : i32
    return %c0_i32, %c0_i32_0 : i32, i32
  }
  func.func @transform_3(%arg0: i32) -> (i32, i32) {
    %c0_i32 = arith.constant 0 : i32
    %c0_i32_0 = arith.constant 0 : i32
    %c0_i32_1 = arith.constant 0 : i32
    return %c0_i32, %c0_i32_0 : i32, i32
  }
  func.func @transform_4(%arg0: i32) -> (i32, i32) {
    %c0_i32 = arith.constant 0 : i32
    %c0_i32_0 = arith.constant 0 : i32
    %c0_i32_1 = arith.constant 0 : i32
    return %c0_i32, %c0_i32_0 : i32, i32
  }
  func.func @transform_5(%arg0: i32) -> (i32, i32) {
    %c0_i32 = arith.constant 0 : i32
    %c0_i32_0 = arith.constant 0 : i32
    %c0_i32_1 = arith.constant 0 : i32
    return %c0_i32, %c0_i32_0 : i32, i32
  }
  func.func @transform_6(%arg0: i32) -> (i32, i32) {
    %c0_i32 = arith.constant 0 : i32
    %c0_i32_0 = arith.constant 0 : i32
    return %arg0, %c0_i32 : i32, i32
  }
}

</mosaic_0001>

<bundles_post_ra>
// kernel: tpu_custom_call.1
= control target key start
LH: loop header
LB: loop body
LE: loop exit
PB: predicated region body
PF: predicated region fallthrough
CT: control target
= control target key end

     0   :  { %11 = vsyncpa [#allocation3], 0  ;;  %s396_s0 = inlined_call_operand.hbm [shape: f32[16,32], index: 0, kind: input, shape index: {}]   ;;  %s397_s1 = inlined_call_operand.hbm [shape: f32[16,32], index: 1, kind: input, shape index: {}]   ;;  %s398_s2 = inlined_call_operand.hbm [shape: f32[32,32], index: 2, kind: input, shape index: {}]   ;;  %s399_s3 = inlined_call_operand.vmem [shape: f32[1,32], index: 3, kind: input, shape index: {}]   ;;  %s400_s4 = inlined_call_operand.vmem [shape: f32[1,32], index: 4, kind: input, shape index: {}]   ;;  %s401_s5 = inlined_call_operand.vmem [shape: f32[1,32], index: 5, kind: input, shape index: {}]   ;;  %s402_s6 = inlined_call_operand.hbm [shape: f32[16,32], index: 6, kind: output, shape index: {}]  }
   0x1   :  { %12 = vsyncpa [#allocation6], 0 }
   0x2   :  { %13 = vsyncpa [#allocation4], 0  ;;  %s31_s23 = sshll.u32 %s397_s1, 4  ;;  %s314_s24 = smov [#allocation5]   ;;  %s32_s23 = int_to_ptr.hbm [resolvable:$true] %s31_s23 }
   0x3   :  { %s33_s25 = sshll.u32 %s314_s24, 4  ;;  %s18_s28 = sshll.u32 %s396_s0, 4  ;;  %s34_s25 = int_to_ptr.vmem [resolvable:$true] %s33_s25  ;;  %s19_s28 = int_to_ptr.hbm [resolvable:$true] %s18_s28 }
   0x4   :  { %s315_s29 = smov 128   ;;  %s316_s30 = smov 8  }
   0x5   :  { %39 = dma.hbm_to_vmem [thread:$0]  %s32_s23, 256, %s34_s25, [#allocation6], %s315_s29, %s315_s29, %s316_s30  }
   0x6   :  { %s317_s7 = smov [#allocation2]   ;;  %s44_s1 = sshll.u32 %s398_s2, 4  ;;  %s45_s1 = int_to_ptr.hbm [resolvable:$true] %s44_s1 }
   0x7   :  { %s20_s8 = sshll.u32 %s317_s7, 4  ;;  %s318_s0 = smov [#allocation7]   ;;  %s21_s8 = int_to_ptr.vmem [resolvable:$true] %s20_s8 }
   0x8   :  { %26 = dma.hbm_to_vmem [thread:$0]  %s19_s28, 256, %s21_s8, [#allocation3], %s315_s29, %s315_s29, %s316_s30  }
   0x9   :  { %s46_s11 = sshll.u32 %s318_s0, 4  ;;  %s47_s11 = int_to_ptr.vmem [resolvable:$true] %s46_s11 }
   0xa   :  { %52 = dma.hbm_to_vmem [thread:$0]  %s45_s1, 512, %s47_s11, [#allocation6], %s315_s29, %s315_s29, %s316_s30  }
   0xb   :  { %308 = dma.done.wait [#allocation3], 256  }
   0xc   :  { %309 = vsyncadd [#allocation3], 4294967040 }
   0xd   :  { %310 = dma.done.wait [#allocation6], 768  }
   0xe   :  { %311 = vsyncadd [#allocation6], 4294966528  ;;  %v74_v0 = vld [vmem:[#allocation7 + $0x18] sm:$0xff]  ;;  %v73_v1 = vld [vmem:[#allocation7 + $0x10] sm:$0xff]  ;;  %vm83_vm0 = vcmask 261120   ;;  %s179_s19 = sshll.u32 %s402_s6, 4  ;;  %s180_s19 = int_to_ptr.hbm [resolvable:$true] %s179_s19 }
   0xf   :  { %102 = vmatpush.msra.mxu0 %v74_v0  ;;  %195 = vmatpush.msra.mxu1 %v74_v0  ;;  %v72_v2 = vld [vmem:[#allocation7 + $0x8] sm:$0xff]  ;;  %v71_v3 = vld [vmem:[#allocation7] sm:$0xff]  ;;  %v113_v8 = vld [vmem:[#allocation5] sm:$0xff] }
  0x10   :  { %v78_v4 = vld [vmem:[#allocation2] sm:$0xff]  ;;  %v79_v5 = vld [vmem:[#allocation2 + $0x8] sm:$0xff]  ;;  %v114_v13 = vld [vmem:[#allocation5 + $0x8] sm:$0xff] }
  0x11   :  { %103 = vmatpush.msra.mxu0 %v73_v1  ;;  %196 = vmatpush.msra.mxu1 %v73_v1  ;;  %v205_v6 = vld [vmem:[%s399_s3] ss:$0 sm:$0xff] }
  0x12   :  { %v206_v41 = vld [vmem:[%s400_s4] ss:$0 sm:$0xff]  ;;  %s319_s4 = smov [#allocation8]  }
  0x13   :  { %104 = vmatpush.msra.mxu0 %v72_v2  ;;  %197 = vmatpush.msra.mxu1 %v72_v2  ;;  %v207_v45 = vld [vmem:[%s401_s5] ss:$0 sm:$0xff]  ;;  %s177_s16 = sshll.u32 %s319_s4, 4  ;;  %s178_s16 = int_to_ptr.vmem [resolvable:$true] %s177_s16 }
  0x15   :  { %105 = vmatpush.msra.mxu0 %v71_v3  ;;  %198 = vmatpush.msra.mxu1 %v71_v3 }
  0x16   :  { %193 = vmatmul.msk.f32.vlgmr.msra.gmra.mxu0 %vm83_vm0, %v78_v4  ;;  %194 = vmatmul.msk.f32.vlgmr.msra.gmra.mxu1 %vm83_vm0, %v79_v5 }
  0x93   :  { %v107_v7 = vpop.f32.mrf.mxu0  ;;  %v110_v9 = vpop.f32.mrf.mxu1 }
  0x94   :  { %v108_v10 = vadd.f32 %v205_v6, %v107_v7  ;;  %v111_v12 = vadd.f32 %v205_v6, %v110_v9 }
  0x96   :  { %v115_v11 = vadd.f32 %v113_v8, %v108_v10  ;;  %v116_v15 = vadd.f32 %v114_v13, %v111_v12 }
  0x98   :  { %v117_v14 = vsel %vm83_vm0, %v115_v11, 0.0  ;;  %v120_v16 = vsel %vm83_vm0, %v116_v15, 0.0 }
  0x99   :  { %118 = vadd.xlane.f32.xlu0 %v117_v14 }
  0xa1   :  { %121 = vadd.xlane.f32.xlu0 %v120_v16 }
 0x10c   :  { %v119_v17 = vpop.xlane.xlu0 %118 }
 0x10d   :  { %v123_v18 = vmul.f32 0.03125, %v119_v17 }
 0x10f   :  { %v125_v19 = vsub.f32 %v115_v11, %v123_v18 }
 0x111   :  { %v127_v20 = vmul.f32 %v125_v19, %v125_v19 }
 0x113   :  { %v129_v21 = vsel %vm83_vm0, %v127_v20, 0.0 }
 0x114   :  { %130 = vadd.xlane.f32.xlu1 %v129_v21  ;;  %v122_v22 = vpop.xlane.xlu0 %121 }
 0x115   :  { %v124_v23 = vmul.f32 0.03125, %v122_v22 }
 0x117   :  { %v126_v24 = vsub.f32 %v116_v15, %v124_v23 }
 0x119   :  { %v128_v25 = vmul.f32 %v126_v24, %v126_v24 }
 0x11b   :  { %v132_v26 = vsel %vm83_vm0, %v128_v25, 0.0 }
 0x11c   :  { %133 = vadd.xlane.f32.xlu1 %v132_v26 }
 0x187   :  { %v131_v27 = vpop.xlane.xlu1 %130 }
 0x188   :  { %v135_v28 = vmul.f32 0.03125, %v131_v27 }
 0x18a   :  { %v137_v29 = vadd.f32 1e-12, %v135_v28 }
 0x18c   :  { %208 = vrsqrt.f32 %v137_v29  ;;  %vm145_vm2 = vweird.f32 %v137_v29 }
 0x18f   :  { %v134_v30 = vpop.xlane.xlu1 %133 }
 0x190   :  { %v136_v31 = vmul.f32 0.03125, %v134_v30 }
 0x192   :  { %v209_v32 = vpop.eup %208  ;;  %v138_v33 = vadd.f32 1e-12, %v136_v31 }
 0x193   :  { %v140_v34 = vmul.f32 %v209_v32, %v137_v29  ;;  %vm146_vm1 = vweird.f32 %v209_v32 }
 0x194   :  { %210 = vrsqrt.f32 %v138_v33  ;;  %vm147_vm3 = vmor %vm145_vm2, %vm146_vm1  ;;  %vm155_vm5 = vweird.f32 %v138_v33 }
 0x195   :  { %v141_v35 = vmul.f32 %v209_v32, %v140_v34 }
 0x197   :  { %v142_v36 = vmul.f32 0.5, %v141_v35 }
 0x199   :  { %v143_v37 = vsub.f32 1.5, %v142_v36 }
 0x19a   :  { %v211_v38 = vpop.eup %210 }
 0x19b   :  { %v144_v39 = vmul.f32 %v209_v32, %v143_v37  ;;  %v150_v40 = vmul.f32 %v211_v38, %v138_v33  ;;  %vm156_vm4 = vweird.f32 %v211_v38 }
 0x19c   :  { %vm157_vm6 = vmor %vm155_vm5, %vm156_vm4 }
 0x19d   :  { %v148_v42 = vsel %vm147_vm3, %v209_v32, %v144_v39  ;;  %v151_v43 = vmul.f32 %v211_v38, %v150_v40 }
 0x19e   :  { %v159_v44 = vmul.f32 %v148_v42, %v125_v19 }
 0x19f   :  { %v152_v46 = vmul.f32 0.5, %v151_v43 }
 0x1a0   :  { %v164_v47 = vmul.f32 %v206_v41, %v159_v44 }
 0x1a1   :  { %v153_v48 = vsub.f32 1.5, %v152_v46 }
 0x1a2   :  { %v169_v49 = vadd.f32 %v207_v45, %v164_v47 }
 0x1a3   :  { %v154_v50 = vmul.f32 %v211_v38, %v153_v48 }
 0x1a4   :  { %171 = vst.msk [vmem:[#allocation8] sm:$0xff] %vm83_vm0, %v169_v49 }
 0x1a5   :  { %v158_v51 = vsel %vm157_vm6, %v211_v38, %v154_v50 }
 0x1a6   :  { %v160_v52 = vmul.f32 %v158_v51, %v126_v24 }
 0x1a8   :  { %v165_v53 = vmul.f32 %v206_v41, %v160_v52 }
 0x1aa   :  { %v170_v54 = vadd.f32 %v207_v45, %v165_v53 }
 0x1ac   :  { %172 = vst.msk [vmem:[#allocation8 + $0x8] sm:$0xff] %vm83_vm0, %v170_v54 }
 0x1ad   :  { %185 = dma.vmem_to_hbm [thread:$0]  %s178_s16, 256, %s180_s19, [#allocation4], %s315_s29, %s315_s29, %s316_s30  }
 0x1ae   :  { %312 = dma.done.wait [#allocation4], 256  }
 0x1af   :  { %313 = vsyncadd [#allocation4], 4294967040 }
 0x1b0   :  { %190 = vsyncpa [#allocation3], 1 }
 0x1b1   :  { %191 = vsyncpa [#allocation6], 1 }
 0x1b2   :  { %192 = vsyncpa [#allocation4], 1 }

</bundles_post_ra>
